<compile_context>
chip_gen: v6e
topology: v6e:2x2x1
jax: 0.10.0
libtpu: 0.0.40
codegen_flags: <defaults>
</compile_context>

<pallas_src>
import jax
import jax.numpy as jnp
from jax.experimental import pallas as pl
from jax.experimental.pallas import tpu as pltpu


def _round_up(x, m):
    return ((x + m - 1) // m) * m


def _pick_batch_tile(B):
    """Batch tile: multiple of 16 (bf16 sublane packing).

    For B > 32, aim for >= 2 grid steps (keeps both v7x TensorCores busy via
    the "parallel" batch axis) and cap at 1024 rows, which amortizes the
    per-grid-step overhead while staying far inside VMEM on every generation
    (v7x's 64 MiB included).
    """
    if B <= 32:
        return _round_up(max(B, 1), 16)
    return min(1024, _round_up((B + 1) // 2, 16))


def dqn_kernel(x_ref, w1_ref, w2_ref, w3_ref, b1_ref, b2_ref, b3_ref, out_ref):
    """Fused 3-layer MLP forward on one (TB, S) batch tile.

    x_ref  : (TB, S)  f32   (cast to bf16 here; no padded wrapper copy)
    w1_ref : (S,  Hp) bf16
    w2_ref : (Hp, Hp) bf16
    w3_ref : (Hp, A)  bf16
    b1_ref : (1, Hp)  f32
    b2_ref : (1, Hp)  f32
    b3_ref : (1, A)   f32
    out_ref: (TB, A)  f32
    """
    x = x_ref[...].astype(jnp.bfloat16)

    # Layer 1: Linear + ReLU (MXU bf16, f32 accumulate / bias / ReLU)
    h1 = jnp.dot(x, w1_ref[...], preferred_element_type=jnp.float32) + b1_ref[...]
    h1 = jnp.maximum(h1, 0.0).astype(jnp.bfloat16)

    # Layer 2: Linear + ReLU
    h2 = jnp.dot(h1, w2_ref[...], preferred_element_type=jnp.float32) + b2_ref[...]
    h2 = jnp.maximum(h2, 0.0).astype(jnp.bfloat16)

    # Layer 3: Linear (no activation) -> only real Q columns are stored
    q = jnp.dot(h2, w3_ref[...], preferred_element_type=jnp.float32) + b3_ref[...]

    out_ref[...] = q


def dqn_forward(state, params):
    """Run the fused DeepQNetwork forward pass.

    state: (B, state_dim) float32
    returns: (B, action_cnt) float32
    """
    B, S = state.shape
    Hp = params["w1"].shape[1]
    A = params["w3"].shape[1]

    TB = _pick_batch_tile(B)
    Bp = _round_up(B, TB)

    # Pad only the batch axis (and only when needed) -- no feature-dim copy.
    if Bp != B:
        x = jnp.zeros((Bp, S), state.dtype).at[:B].set(state)
    else:
        x = state

    grid = (Bp // TB,)

    flops = 2 * Bp * (S * Hp + Hp * Hp + Hp * A)
    bytes_accessed = (Bp * S * 4                                  # state in
                      + (S * Hp + Hp * Hp + Hp * A) * 2           # bf16 weights
                      + (2 * Hp + A) * 4                          # f32 biases
                      + Bp * A * 4)                               # f32 output

    out = pl.pallas_call(
        dqn_kernel,
        out_shape=jax.ShapeDtypeStruct((Bp, A), jnp.float32),
        grid=grid,
        in_specs=[
            pl.BlockSpec((TB, S), lambda i: (i, 0)),    # state tile (pipelined)
            pl.BlockSpec((S, Hp), lambda i: (0, 0)),    # w1 (VMEM-resident)
            pl.BlockSpec((Hp, Hp), lambda i: (0, 0)),   # w2 (VMEM-resident)
            pl.BlockSpec((Hp, A), lambda i: (0, 0)),    # w3 (VMEM-resident)
            pl.BlockSpec((1, Hp), lambda i: (0, 0)),    # b1
            pl.BlockSpec((1, Hp), lambda i: (0, 0)),    # b2
            pl.BlockSpec((1, A), lambda i: (0, 0)),     # b3
        ],
        out_specs=pl.BlockSpec((TB, A), lambda i: (i, 0)),
        compiler_params=pltpu.CompilerParams(
            dimension_semantics=("parallel",)),
        cost_estimate=pl.CostEstimate(
            flops=flops, transcendentals=0, bytes_accessed=bytes_accessed),
    )(x, params["w1"], params["w2"], params["w3"],
      params["b1"], params["b2"], params["b3"])

    return out[:B] if Bp != B else out


def init_params(key, state_dim, action_cnt, num_of_neurons):
    """PyTorch-nn.Linear-style init.

    Weights are stored as (in_features, out_features) -- transpose of PyTorch
    -- so the kernel computes y = x @ W + b directly. The hidden dim is
    zero-padded to a multiple of 128 (lane-dense intermediates); state/action
    dims are kept at their true sizes. Weights bf16, biases f32.
    """
    Hp = _round_up(num_of_neurons, 128)

    def linear_init(k, fan_in, fan_out, in_p, out_p):
        kw, kb = jax.random.split(k)
        bound = 1.0 / jnp.sqrt(fan_in)
        w = jax.random.uniform(kw, (fan_in, fan_out), jnp.float32, -bound, bound)
        b = jax.random.uniform(kb, (fan_out,), jnp.float32, -bound, bound)
        w_pad = jnp.zeros((in_p, out_p), jnp.float32).at[:fan_in, :fan_out].set(w)
        b_pad = jnp.zeros((1, out_p), jnp.float32).at[0, :fan_out].set(b)
        return w_pad.astype(jnp.bfloat16), b_pad

    k1, k2, k3 = jax.random.split(key, 3)
    w1, b1 = linear_init(k1, state_dim, num_of_neurons, state_dim, Hp)
    w2, b2 = linear_init(k2, num_of_neurons, num_of_neurons, Hp, Hp)
    w3, b3 = linear_init(k3, num_of_neurons, action_cnt, Hp, action_cnt)

    return {"w1": w1, "w2": w2, "w3": w3, "b1": b1, "b2": b2, "b3": b3}


def dqn_ref(state, params):
    """Pure-JAX reference using the same bf16 params / f32 accumulation."""
    x = state.astype(jnp.bfloat16)
    h1 = jnp.maximum(
        jnp.dot(x, params["w1"], preferred_element_type=jnp.float32)
        + params["b1"], 0.0)
    h2 = jnp.maximum(
        jnp.dot(h1.astype(jnp.bfloat16), params["w2"],
                preferred_element_type=jnp.float32) + params["b2"], 0.0)
    q = jnp.dot(h2.astype(jnp.bfloat16), params["w3"],
                preferred_element_type=jnp.float32) + params["b3"]
    return q


if __name__ == "__main__":
    state_dim = 16
    action_cnt = 4
    num_of_neurons = 32

    key = jax.random.PRNGKey(0)
    k_params, k_s1, k_s2 = jax.random.split(key, 3)
    params = init_params(k_params, state_dim, action_cnt, num_of_neurons)

    # Small batch (single grid step).
    state_small = jax.random.normal(k_s1, (8, state_dim), dtype=jnp.float32)
    out_small = jax.block_until_ready(dqn_forward(state_small, params))
    ref_small = dqn_ref(state_small, params)
    assert out_small.shape == (8, action_cnt)
    assert jnp.allclose(out_small, ref_small, atol=1e-2, rtol=1e-2), (
        f"max abs err = {jnp.max(jnp.abs(out_small - ref_small))}")

    # Larger batch exercising the multi-step grid + batch padding path.
    state_big = jax.random.normal(k_s2, (72, state_dim), dtype=jnp.float32)
    out_big = jax.block_until_ready(dqn_forward(state_big, params))
    ref_big = dqn_ref(state_big, params)
    assert out_big.shape == (72, action_cnt)
    assert jnp.allclose(out_big, ref_big, atol=1e-2, rtol=1e-2), (
        f"max abs err = {jnp.max(jnp.abs(out_big - ref_big))}")

    print("KERNEL_OK")
</pallas_src>

<mosaic_0001>
module attributes {stable_mosaic.version = 11 : i64} {
  func.func @dqn_kernel(%arg0: i32, %arg1: memref<16x16xf32, #tpu.memory_space<vmem>>, %arg2: memref<16x128xbf16, #tpu.memory_space<vmem>>, %arg3: memref<128x128xbf16, #tpu.memory_space<vmem>>, %arg4: memref<128x4xbf16, #tpu.memory_space<vmem>>, %arg5: memref<1x128xf32, #tpu.memory_space<vmem>>, %arg6: memref<1x128xf32, #tpu.memory_space<vmem>>, %arg7: memref<1x4xf32, #tpu.memory_space<vmem>>, %arg8: memref<16x4xf32, #tpu.memory_space<vmem>>) attributes {dimension_semantics = [#tpu.dimension_semantics<parallel>], iteration_bounds = array<i64: 1>, scalar_prefetch = 0 : i64, scratch_operands = 0 : i64, tpu.core_type = #tpu.core_type<tc>, window_params = [{transform_indices = @transform_0, window_bounds = array<i64: 16, 16>}, {pipeline_mode = #tpu.pipeline_mode<synchronous>, transform_indices = @transform_1, window_bounds = array<i64: 16, 128>}, {pipeline_mode = #tpu.pipeline_mode<synchronous>, transform_indices = @transform_2, window_bounds = array<i64: 128, 128>}, {pipeline_mode = #tpu.pipeline_mode<synchronous>, transform_indices = @transform_3, window_bounds = array<i64: 128, 4>}, {pipeline_mode = #tpu.pipeline_mode<synchronous>, transform_indices = @transform_4, window_bounds = array<i64: 1, 128>}, {pipeline_mode = #tpu.pipeline_mode<synchronous>, transform_indices = @transform_5, window_bounds = array<i64: 1, 128>}, {pipeline_mode = #tpu.pipeline_mode<synchronous>, transform_indices = @transform_6, window_bounds = array<i64: 1, 4>}, {transform_indices = @transform_7, window_bounds = array<i64: 16, 4>}]} {
    %c0 = arith.constant 0 : index
    %c0_0 = arith.constant 0 : index
    %0 = vector.load %arg1[%c0, %c0_0] : memref<16x16xf32, #tpu.memory_space<vmem>>, vector<16x16xf32>
    %1 = arith.truncf %0 : vector<16x16xf32> to vector<16x16xbf16>
    %c0_1 = arith.constant 0 : index
    %c0_2 = arith.constant 0 : index
    %2 = vector.load %arg2[%c0_1, %c0_2] : memref<16x128xbf16, #tpu.memory_space<vmem>>, vector<16x128xbf16>
    %cst = arith.constant dense<0.000000e+00> : vector<16x128xf32>
    %3 = tpu.matmul %1, %2, %cst {dimension_numbers = #tpu.dot_dimension_numbers<[1], [0], [0], [1], [0, 0, 1, 1], [], []>} : vector<16x16xbf16>, vector<16x128xbf16>, vector<16x128xf32> -> vector<16x128xf32>
    %c0_3 = arith.constant 0 : index
    %c0_4 = arith.constant 0 : index
    %4 = vector.load %arg5[%c0_3, %c0_4] : memref<1x128xf32, #tpu.memory_space<vmem>>, vector<1x128xf32>
    %5 = vector.broadcast %4 : vector<1x128xf32> to vector<16x128xf32>
    %6 = arith.addf %3, %5 : vector<16x128xf32>
    %cst_5 = arith.constant 0.000000e+00 : f32
    %7 = vector.broadcast %cst_5 : f32 to vector<16x128xf32>
    %8 = arith.maximumf %6, %7 : vector<16x128xf32>
    %9 = arith.truncf %8 : vector<16x128xf32> to vector<16x128xbf16>
    %c0_6 = arith.constant 0 : index
    %c0_7 = arith.constant 0 : index
    %10 = vector.load %arg3[%c0_6, %c0_7] : memref<128x128xbf16, #tpu.memory_space<vmem>>, vector<128x128xbf16>
    %cst_8 = arith.constant dense<0.000000e+00> : vector<16x128xf32>
    %11 = tpu.matmul %9, %10, %cst_8 {dimension_numbers = #tpu.dot_dimension_numbers<[1], [0], [0], [1], [0, 0, 1, 1], [], []>} : vector<16x128xbf16>, vector<128x128xbf16>, vector<16x128xf32> -> vector<16x128xf32>
    %c0_9 = arith.constant 0 : index
    %c0_10 = arith.constant 0 : index
    %12 = vector.load %arg6[%c0_9, %c0_10] : memref<1x128xf32, #tpu.memory_space<vmem>>, vector<1x128xf32>
    %13 = vector.broadcast %12 : vector<1x128xf32> to vector<16x128xf32>
    %14 = arith.addf %11, %13 : vector<16x128xf32>
    %cst_11 = arith.constant 0.000000e+00 : f32
    %15 = vector.broadcast %cst_11 : f32 to vector<16x128xf32>
    %16 = arith.maximumf %14, %15 : vector<16x128xf32>
    %17 = arith.truncf %16 : vector<16x128xf32> to vector<16x128xbf16>
    %c0_12 = arith.constant 0 : index
    %c0_13 = arith.constant 0 : index
    %18 = vector.load %arg4[%c0_12, %c0_13] : memref<128x4xbf16, #tpu.memory_space<vmem>>, vector<128x4xbf16>
    %cst_14 = arith.constant dense<0.000000e+00> : vector<16x4xf32>
    %19 = tpu.matmul %17, %18, %cst_14 {dimension_numbers = #tpu.dot_dimension_numbers<[1], [0], [0], [1], [0, 0, 1, 1], [], []>} : vector<16x128xbf16>, vector<128x4xbf16>, vector<16x4xf32> -> vector<16x4xf32>
    %c0_15 = arith.constant 0 : index
    %c0_16 = arith.constant 0 : index
    %20 = vector.load %arg7[%c0_15, %c0_16] : memref<1x4xf32, #tpu.memory_space<vmem>>, vector<1x4xf32>
    %21 = vector.broadcast %20 : vector<1x4xf32> to vector<16x4xf32>
    %22 = arith.addf %19, %21 : vector<16x4xf32>
    %c0_17 = arith.constant 0 : index
    %c0_18 = arith.constant 0 : index
    %23 = vector.load %arg8[%c0_17, %c0_18] : memref<16x4xf32, #tpu.memory_space<vmem>>, vector<16x4xf32>
    tpu.vector_store %arg8[%c0_17, %c0_18], %22 {strides = array<i32>} : memref<16x4xf32, #tpu.memory_space<vmem>>, vector<16x4xf32>,
    return
  }
  func.func @transform_0(%arg0: i32) -> (i32, i32) {
    %c0_i32 = arith.constant 0 : i32
    %c0_i32_0 = arith.constant 0 : i32
    return %arg0, %c0_i32 : i32, i32
  }
  func.func @transform_1(%arg0: i32) -> (i32, i32) {
    %c0_i32 = arith.constant 0 : i32
    %c0_i32_0 = arith.constant 0 : i32
    %c0_i32_1 = arith.constant 0 : i32
    return %c0_i32, %c0_i32_0 : i32, i32
  }
  func.func @transform_2(%arg0: i32) -> (i32, i32) {
    %c0_i32 = arith.constant 0 : i32
    %c0_i32_0 = arith.constant 0 : i32
    %c0_i32_1 = arith.constant 0 : i32
    return %c0_i32, %c0_i32_0 : i32, i32
  }
  func.func @transform_3(%arg0: i32) -> (i32, i32) {
    %c0_i32 = arith.constant 0 : i32
    %c0_i32_0 = arith.constant 0 : i32
    %c0_i32_1 = arith.constant 0 : i32
    return %c0_i32, %c0_i32_0 : i32, i32
  }
  func.func @transform_4(%arg0: i32) -> (i32, i32) {
    %c0_i32 = arith.constant 0 : i32
    %c0_i32_0 = arith.constant 0 : i32
    %c0_i32_1 = arith.constant 0 : i32
    return %c0_i32, %c0_i32_0 : i32, i32
  }
  func.func @transform_5(%arg0: i32) -> (i32, i32) {
    %c0_i32 = arith.constant 0 : i32
    %c0_i32_0 = arith.constant 0 : i32
    %c0_i32_1 = arith.constant 0 : i32
    return %c0_i32, %c0_i32_0 : i32, i32
  }
  func.func @transform_6(%arg0: i32) -> (i32, i32) {
    %c0_i32 = arith.constant 0 : i32
    %c0_i32_0 = arith.constant 0 : i32
    %c0_i32_1 = arith.constant 0 : i32
    return %c0_i32, %c0_i32_0 : i32, i32
  }
  func.func @transform_7(%arg0: i32) -> (i32, i32) {
    %c0_i32 = arith.constant 0 : i32
    %c0_i32_0 = arith.constant 0 : i32
    return %arg0, %c0_i32 : i32, i32
  }
}

</mosaic_0001>

<bundles_post_ra>
// kernel: tpu_custom_call.1
= control target key start
LH: loop header
LB: loop body
LE: loop exit
PB: predicated region body
PF: predicated region fallthrough
CT: control target
= control target key end

     0   :  { %12 = vsyncpa [#allocation3], 0  ;;  %s653_s0 = inlined_call_operand.hbm [shape: f32[16,16], index: 0, kind: input, shape index: {}]   ;;  %s654_s1 = inlined_call_operand.hbm [shape: bf16[16,128], index: 1, kind: input, shape index: {}]   ;;  %s655_s2 = inlined_call_operand.vmem [shape: bf16[128,128], index: 2, kind: input, shape index: {}]   ;;  %s656_s3 = inlined_call_operand.vmem [shape: bf16[128,4], index: 3, kind: input, shape index: {}]   ;;  %s657_s4 = inlined_call_operand.vmem [shape: f32[1,128], index: 4, kind: input, shape index: {}]   ;;  %s658_s5 = inlined_call_operand.vmem [shape: f32[1,128], index: 5, kind: input, shape index: {}]   ;;  %s659_s6 = inlined_call_operand.vmem [shape: f32[1,4], index: 6, kind: input, shape index: {}]   ;;  %s660_s7 = inlined_call_operand.vmem [shape: f32[16,4], index: 7, kind: output, shape index: {}]  }
   0x1   :  { %13 = vsyncpa [#allocation5], 0  ;;  %s513_s24 = smov [#allocation2]  }
   0x2   :  { %s19_s25 = sshll.u32 %s513_s24, 4  ;;  %s20_s25 = int_to_ptr.vmem [resolvable:$true] %s19_s25 }
   0x3   :  { %s477_s26 = scalar_lea.vmem %s20_s25, 256  ;;  %p482_p1 = scmp.lt.s32.totalorder %s20_s25, %s20_s25 }
   0x4   :  { %p478_p0 = scmp.ne.s32.totalorder %s20_s25, %s477_s26  ;;  %p483_p2 = scmp.lt.s32.totalorder %s477_s26, %s477_s26 }
   0x6   :  { %p484_p3 = por %p483_p2, %p482_p1 }
   0x8   :  { %p485_p4 = pnand %p484_p3, %p478_p0 }
   0xa   :  { %488 = shalt.err (!%p485_p4)
}
   0xb   :  { %s514_s27 = smov 128   ;;  %s515_s28 = smov 8  }
   0xc   :  { %25 = dma.hbm_to_vmem [thread:$0]  %s653_s0, 256, %s20_s25, [#allocation3], %s514_s27, %s514_s27, %s515_s28  }
   0xd   :  { %s516_s8 = smov [#allocation4]  }
   0xe   :  { %s31_s9 = sshll.u32 %s516_s8, 4  ;;  %s32_s9 = int_to_ptr.vmem [resolvable:$true] %s31_s9 }
   0xf   :  { %s497_s10 = scalar_lea.vmem %s32_s9, 128  ;;  %p502_p6 = scmp.lt.s32.totalorder %s32_s9, %s32_s9 }
  0x10   :  { %p498_p5 = scmp.ne.s32.totalorder %s32_s9, %s497_s10  ;;  %p503_p7 = scmp.lt.s32.totalorder %s497_s10, %s497_s10 }
  0x12   :  { %p504_p8 = por %p503_p7, %p502_p6 }
  0x14   :  { %p505_p9 = pnand %p504_p8, %p498_p5 }
  0x16   :  { %508 = shalt.err (!%p505_p9)
}
  0x17   :  { %s517_s11 = smov 64   ;;  %s518_s12 = smov 4  }
  0x18   :  { %37 = dma.hbm_to_vmem [thread:$0]  %s654_s1, 128, %s32_s9, [#allocation5], %s517_s11, %s517_s11, %s518_s12  }
  0x19   :  { %509 = dma.done.wait [#allocation3], 256  }
  0x1a   :  { %510 = vsyncadd [#allocation3], 4294967040 }
  0x1b   :  { %511 = dma.done.wait [#allocation5], 128  }
  0x1c   :  { %512 = vsyncadd [#allocation5], 4294967168  ;;  %v519_v0 = vmov 0.0   ;;  %vm520_vm0 = vmmov 0   ;;  %v452_v1 = vld [vmem:[#allocation4] sm:$0xff]   ;;  %v55_v2 = vld [vmem:[#allocation2] sm:$0xff] }
  0x1d   :  { %398 = vmatprep.subr.bf16.mxu0 %v519_v0  ;;  %400 = vmatprep.mubr.msk.bf16.mxu0 %vm520_vm0, %v519_v0  ;;  %v56_v3 = vld [vmem:[#allocation2 + $0x8] sm:$0xff]  ;;  %vm73_vm1 = vcmask 130048   ;;  %v453_v5 = vld [vmem:[%s655_s2 + $0x38] sm:$0xff]   ;;  %v454_v6 = vld [vmem:[%s655_s2 + $0x30] sm:$0xff]   ;;  %vm348_vm2 = vcmask 31744  }
  0x1e   :  { %404 = vmatprep.subr.bf16.mxu1 %v519_v0  ;;  %420 = vmatprep.mubr.msk.bf16.mxu1 %vm520_vm0, %v519_v0  ;;  %v57_v4 = vpack.c.bf16 %v56_v3, %v55_v2  ;;  %v455_v7 = vld [vmem:[%s655_s2 + $0x28] sm:$0xff]   ;;  %v456_v8 = vld [vmem:[%s655_s2 + $0x20] sm:$0xff]   ;;  %v457_v9 = vld [vmem:[%s655_s2 + $0x18] sm:$0xff]  }
  0x1f   :  { %399 = vmatpush3.bf16.msra.mxu0 %v452_v1  ;;  %405 = vmatpush3.bf16.msra.mxu1 %v453_v5  ;;  %v458_v10 = vld [vmem:[%s655_s2 + $0x10] sm:$0xff]   ;;  %v459_v11 = vld [vmem:[%s655_s2 + $0x8] sm:$0xff]   ;;  %v460_v12 = vld [vmem:[%s655_s2] sm:$0xff]  }
  0x20   :  { %424 = vmatprep.subr.bf16.mxu0 %v519_v0  ;;  %406 = vmatprep.subr.bf16.mxu1 %v519_v0  ;;  %v461_v13 = vld [vmem:[%s656_s3 + $0x38] sm:$0xff]   ;;  %v462_v14 = vld [vmem:[%s656_s3 + $0x30] sm:$0xff]   ;;  %v463_v15 = vld [vmem:[%s656_s3 + $0x28] sm:$0xff]  }
  0x21   :  { %v464_v16 = vld [vmem:[%s656_s3 + $0x20] sm:$0xff]   ;;  %v465_v17 = vld [vmem:[%s656_s3 + $0x18] sm:$0xff]   ;;  %v466_v28 = vld [vmem:[%s656_s3 + $0x10] sm:$0xff]  }
  0x22   :  { %401 = vmatmul.mubr.msk.bf16.vlgmr.msra.gmra.mxu0 %vm73_vm1, %v57_v4  ;;  %v357_v18 = vld [vmem:[%s657_s4] ss:$0 sm:$0xff]  ;;  %v467_v29 = vld [vmem:[%s656_s3 + $0x8] sm:$0xff]  }
  0x23   :  { %440 = vmatprep.mubr.msk.bf16.mxu0 %vm520_vm0, %v519_v0  ;;  %407 = vmatpush3.bf16.msra.mxu1 %v454_v6  ;;  %v468_v30 = vld [vmem:[%s656_s3] sm:$0xff]  }
  0x24   :  { %408 = vmatprep.subr.bf16.mxu1 %v519_v0  ;;  %425 = vmatpush3.bf16.msra.mxu0 %v461_v13  ;;  %v360_v31 = vld [vmem:[%s658_s5] ss:$0 sm:$0xff] }
  0x25   :  { %426 = vmatprep.subr.bf16.mxu0 %v519_v0  ;;  %v369_v41 = vld [vmem:[%s659_s6] ss:$0 sm:$0xff] }
  0x27   :  { %409 = vmatpush3.bf16.msra.mxu1 %v455_v7 }
  0x28   :  { %410 = vmatprep.subr.bf16.mxu1 %v519_v0  ;;  %427 = vmatpush3.bf16.msra.mxu0 %v462_v14 }
  0x29   :  { %428 = vmatprep.subr.bf16.mxu0 %v519_v0 }
  0x2b   :  { %411 = vmatpush3.bf16.msra.mxu1 %v456_v8 }
  0x2c   :  { %412 = vmatprep.subr.bf16.mxu1 %v519_v0  ;;  %429 = vmatpush3.bf16.msra.mxu0 %v463_v15 }
  0x2d   :  { %430 = vmatprep.subr.bf16.mxu0 %v519_v0 }
  0x2f   :  { %413 = vmatpush3.bf16.msra.mxu1 %v457_v9 }
  0x30   :  { %414 = vmatprep.subr.bf16.mxu1 %v519_v0  ;;  %431 = vmatpush3.bf16.msra.mxu0 %v464_v16 }
  0x31   :  { %432 = vmatprep.subr.bf16.mxu0 %v519_v0 }
  0x33   :  { %415 = vmatpush3.bf16.msra.mxu1 %v458_v10 }
  0x34   :  { %416 = vmatprep.subr.bf16.mxu1 %v519_v0  ;;  %433 = vmatpush3.bf16.msra.mxu0 %v465_v17 }
  0x35   :  { %434 = vmatprep.subr.bf16.mxu0 %v519_v0 }
  0x37   :  { %417 = vmatpush3.bf16.msra.mxu1 %v459_v11 }
  0x38   :  { %418 = vmatprep.subr.bf16.mxu1 %v519_v0  ;;  %435 = vmatpush3.bf16.msra.mxu0 %v466_v28 }
  0x39   :  { %436 = vmatprep.subr.bf16.mxu0 %v519_v0 }
  0x3b   :  { %419 = vmatpush3.bf16.msra.mxu1 %v460_v12 }
  0x3c   :  { %437 = vmatpush3.bf16.msra.mxu0 %v467_v29 }
  0x3d   :  { %438 = vmatprep.subr.bf16.mxu0 %v519_v0 }
  0x40   :  { %439 = vmatpush3.bf16.msra.mxu0 %v468_v30 }
  0xe2   :  { %v111_v19 = vpop.f32.mrf.mxu0 }
  0xe3   :  { %v112_v21 = vadd.f32 %v357_v18, %v111_v19 }
  0xe4   :  { %v402_v20 = vpop.f32.mrf.mxu0 }
  0xe5   :  { %v118_v25 = vmax.f32 %v112_v21, 0.0 }
  0xe6   :  { %v114_v22 = vpop.f32.mrf.mxu0 }
  0xe7   :  { %v115_v23 = vadd.f32 %v357_v18, %v114_v22 }
  0xe8   :  { %v403_v24 = vpop.f32.mrf.mxu0 }
  0xe9   :  { %v119_v26 = vmax.f32 %v115_v23, 0.0 }
  0xeb   :  { %v120_v27 = vpack.c.bf16 %v119_v26, %v118_v25 }
  0xed   :  { %421 = vmatmul.mubr.bf16.vlgmr.msra.gmra.mxu1 %v120_v27 }
 0x1ad   :  { %v226_v32 = vpop.f32.mrf.mxu1 }
 0x1ae   :  { %v227_v34 = vadd.f32 %v360_v31, %v226_v32 }
 0x1af   :  { %v422_v33 = vpop.f32.mrf.mxu1 }
 0x1b0   :  { %v233_v38 = vmax.f32 %v227_v34, 0.0 }
 0x1b1   :  { %v229_v35 = vpop.f32.mrf.mxu1 }
 0x1b2   :  { %v230_v36 = vadd.f32 %v360_v31, %v229_v35 }
 0x1b3   :  { %v423_v37 = vpop.f32.mrf.mxu1 }
 0x1b4   :  { %v234_v39 = vmax.f32 %v230_v36, 0.0 }
 0x1b6   :  { %v235_v40 = vpack.c.bf16 %v234_v39, %v233_v38 }
 0x1b8   :  { %441 = vmatmul.mubr.bf16.vlgmr.msra.gmra.mxu0 %v235_v40 }
 0x278   :  { %v341_v42 = vpop.f32.mrf.mxu0 }
 0x279   :  { %v342_v43 = vadd.f32 %v369_v41, %v341_v42 }
 0x27a   :  { %v442_v44 = vpop.f32.mrf.mxu0 }
 0x27b   :  { %349 = vst.msk [vmem:[%s660_s7] sm:$0xff] %vm348_vm2, %v342_v43 }
 0x27c   :  { %v344_v45 = vpop.f32.mrf.mxu0 }
 0x27d   :  { %v345_v46 = vadd.f32 %v369_v41, %v344_v45 }
 0x27e   :  { %v443_v47 = vpop.f32.mrf.mxu0 }
 0x27f   :  { %350 = vst.msk [vmem:[%s660_s7 + $0x8] sm:$0xff] %vm348_vm2, %v345_v46 }
 0x280   :  { %355 = vsyncpa [#allocation3], 1 }
 0x281   :  { %356 = vsyncpa [#allocation5], 1 }

</bundles_post_ra>
